<compile_context>
chip_gen: v7x
topology: tpu7x:2x2x1
jax: 0.10.0
libtpu: 0.0.40
codegen_flags: <defaults>
</compile_context>

<pallas_src>
import jax
import jax.numpy as jnp
from jax.experimental import pallas as pl
from jax.experimental.pallas import tpu as pltpu


def _mish_kernel(x_ref, o_ref):
    xf = x_ref[...].astype(jnp.float32)
    # mish(x) = x * tanh(softplus(x)) = x * t*(t+2) / (t*(t+2) + 2),  t = e^x.
    # Clamp the exponent so t*(t+2) cannot overflow in f32; for x >= 20 the
    # ratio is already exactly 1.0, so the clamp does not change the result.
    t = jnp.exp(jnp.minimum(xf, 20.0))
    num = t * (t + 2.0)
    # Exact divide (kernel is HBM-bound, VPU slack makes this free) instead of
    # the approx reciprocal that previously broke the 1e-3 accuracy check.
    o_ref[...] = (xf * num / (num + 2.0)).astype(o_ref.dtype)


_COL_CANDIDATES = (8192, 4096, 2048, 1024, 512, 256, 128)
_VMEM_LIMIT_BYTES = 48 * 1024 * 1024


def _min_sublanes(dtype) -> int:
    itemsize = jnp.dtype(dtype).itemsize
    return {4: 8, 2: 16, 1: 32}.get(itemsize, 8)


def _chip_params():
    """(target_block_bytes, vmem_limit_bytes, two_tensorcores)."""
    try:
        kind = jax.devices()[0].device_kind.lower()
    except Exception:  # pragma: no cover - interpret / unknown backend
        kind = ""
    if "v5" in kind:
        # ~0.82 TB/s: 2 MiB steps already hide the per-step overhead.
        return 2 * 1024 * 1024, _VMEM_LIMIT_BYTES, False
    if "v6" in kind:
        # 128 MiB VMEM, ~1.4 TB/s: a modest bump is all that helps.
        return 4 * 1024 * 1024, _VMEM_LIMIT_BYTES, False
    # v7x (64 MiB VMEM/TC, 3.2 TB/s, 2 TCs) and unknown/future chips.
    return 6 * 1024 * 1024, _VMEM_LIMIT_BYTES, "v7" in kind


def _pick_tr(rows, cols, itemsize, min_sub, block_bytes, two_cores):
    """Row-tile: big blocks, dtype-aware sublane granularity, full last block."""
    if rows <= min_sub:
        return rows                       # full extent (allowed by tiling rule)
    tr = max(min_sub, (block_bytes // (cols * itemsize)) // min_sub * min_sub)
    tr = min(tr, (rows // min_sub) * min_sub)
    if two_cores and rows >= 2 * min_sub:
        # >= 2 balanced grid steps so both v7x TensorCores get work.
        tr = min(tr, max(min_sub, (rows // 2) // min_sub * min_sub))
    # Prefer a tr that divides rows evenly (every step a full, unmasked store),
    # but never shrink the tile by more than 2x to achieve it.
    if rows % min_sub == 0:
        rb = rows // min_sub
        for nb in range(tr // min_sub, 0, -1):
            if rb % nb == 0:
                if nb * min_sub * 2 >= tr:
                    tr = nb * min_sub
                break
    return max(tr, min_sub)


def _mish_jnp(x):
    """Plain-jnp mish (used only for the <128-element ragged tail)."""
    xf = x.astype(jnp.float32)
    sp = jnp.maximum(xf, 0.0) + jnp.log1p(jnp.exp(-jnp.abs(xf)))
    return (xf * jnp.tanh(sp)).astype(x.dtype)


def _mish_flat(x_flat, donate=False):
    """Mish on a flat array whose size is a multiple of 128."""
    n = x_flat.size
    dtype = x_flat.dtype
    itemsize = jnp.dtype(dtype).itemsize
    min_sub = _min_sublanes(dtype)
    block_bytes, vmem_limit, two_cores = _chip_params()

    # Widest lane-dense slab that divides n with >= min_sub rows, else widest
    # that divides n (cols=128 always works since n % 128 == 0 here).
    cols = None
    for c in _COL_CANDIDATES:
        if n % c == 0 and n // c >= min_sub:
            cols = c
            break
    if cols is None:
        for c in _COL_CANDIDATES:
            if n % c == 0:
                cols = c
                break
    rows = n // cols
    x2d = x_flat.reshape(rows, cols)

    tr = _pick_tr(rows, cols, itemsize, min_sub, block_bytes, two_cores)
    grid = (pl.cdiv(rows, tr),)

    out2d = pl.pallas_call(
        _mish_kernel,
        out_shape=jax.ShapeDtypeStruct((rows, cols), dtype),
        grid_spec=pltpu.PrefetchScalarGridSpec(
            num_scalar_prefetch=0,
            grid=grid,
            in_specs=[pl.BlockSpec((tr, cols), lambda i: (i, 0))],
            out_specs=pl.BlockSpec((tr, cols), lambda i: (i, 0)),
        ),
        compiler_params=pltpu.CompilerParams(
            dimension_semantics=("parallel",),
            vmem_limit_bytes=vmem_limit,
        ),
        # Only removes the separate output HBM allocation; HBM traffic is
        # unchanged (still N reads + N writes). Opt-in via `donate`.
        input_output_aliases=({0: 0} if donate else {}),
    )(x2d)
    return out2d.reshape(-1)


def mish(x: jax.Array, donate: bool = False) -> jax.Array:
    """Elementwise Mish via Pallas (any float shape/dtype)."""
    orig_shape = x.shape
    n = x.size
    if n == 0:
        return x

    x_flat = jnp.reshape(x, (-1,))
    tail_n = n % 128
    if tail_n == 0:
        return _mish_flat(x_flat, donate=donate).reshape(orig_shape)

    # Ragged size: kernel on the largest 128-divisible prefix, plain jnp on the
    # tiny (<128 element) tail. Avoids padding/copying the whole tensor.
    main_n = n - tail_n
    y_tail = _mish_jnp(x_flat[main_n:])
    if main_n == 0:
        return y_tail.reshape(orig_shape)
    y_main = _mish_flat(x_flat[:main_n])
    return jnp.concatenate([y_main, y_tail]).reshape(orig_shape)


def mish_reference(x: jax.Array) -> jax.Array:
    """PyTorch semantics: x * tanh(F.softplus(x)), computed in f32."""
    xf = x.astype(jnp.float32)
    sp = jnp.maximum(xf, 0.0) + jnp.log1p(jnp.exp(-jnp.abs(xf)))
    return (xf * jnp.tanh(sp)).astype(x.dtype)


if __name__ == "__main__":
    key = jax.random.PRNGKey(0)

    # f32, NCHW, 128-divisible size (main path, no host pad/copy)
    x = jax.random.normal(key, (2, 4, 16, 16), dtype=jnp.float32) * 3.0
    y = mish(x)
    jax.block_until_ready(y)
    y_ref = mish_reference(x)
    assert y.shape == x.shape and y.dtype == x.dtype
    assert jnp.allclose(y, y_ref, atol=1e-3, rtol=1e-3), \
        float(jnp.max(jnp.abs(y - y_ref)))

    # awkward size (not a multiple of 128) -> exercises the prefix+tail path
    xb = jax.random.normal(jax.random.PRNGKey(1), (3, 5, 7, 11),
                           dtype=jnp.float32) * 3.0
    yb = mish(xb)
    jax.block_until_ready(yb)
    assert jnp.allclose(yb, mish_reference(xb), atol=1e-3, rtol=1e-3)

    # bf16 input -> exercises the 16-sublane minimum tile
    xc = (jax.random.normal(jax.random.PRNGKey(2), (2, 4, 16, 16),
                            dtype=jnp.float32) * 3.0).astype(jnp.bfloat16)
    yc = mish(xc)
    jax.block_until_ready(yc)
    assert yc.dtype == jnp.bfloat16
    assert jnp.allclose(yc.astype(jnp.float32),
                        mish_reference(xc).astype(jnp.float32),
                        atol=3e-2, rtol=3e-2)

    # larger tensor -> exercises multi-step grid / divisor-aligned tiling
    xd = jax.random.normal(jax.random.PRNGKey(3), (4, 8, 64, 64),
                           dtype=jnp.float32) * 3.0
    yd = mish(xd)
    jax.block_until_ready(yd)
    assert jnp.allclose(yd, mish_reference(xd), atol=1e-3, rtol=1e-3)

    print("KERNEL_OK")
</pallas_src>

<mosaic_0001>
module attributes {stable_mosaic.version = 11 : i64} {
  func.func @_mish_kernel(%arg0: i32, %arg1: memref<8x256xf32, #tpu.memory_space<vmem>>, %arg2: memref<8x256xf32, #tpu.memory_space<vmem>>) attributes {dimension_semantics = [#tpu.dimension_semantics<parallel>], iteration_bounds = array<i64: 1>, scalar_prefetch = 0 : i64, scratch_operands = 0 : i64, tpu.core_type = #tpu.core_type<tc>, window_params = [{transform_indices = @transform_0, window_bounds = array<i64: 8, 256>}, {transform_indices = @transform_1, window_bounds = array<i64: 8, 256>}]} {
    %c0 = arith.constant 0 : index
    %c0_0 = arith.constant 0 : index
    %0 = vector.load %arg1[%c0, %c0_0] : memref<8x256xf32, #tpu.memory_space<vmem>>, vector<8x256xf32>
    %cst = arith.constant 2.000000e+01 : f32
    %1 = vector.broadcast %cst : f32 to vector<8x256xf32>
    %2 = arith.minimumf %0, %1 : vector<8x256xf32>
    %3 = math.exp %2 : vector<8x256xf32>
    %cst_1 = arith.constant 2.000000e+00 : f32
    %4 = vector.broadcast %cst_1 : f32 to vector<8x256xf32>
    %5 = arith.addf %3, %4 : vector<8x256xf32>
    %6 = arith.mulf %3, %5 : vector<8x256xf32>
    %7 = arith.mulf %0, %6 : vector<8x256xf32>
    %cst_2 = arith.constant 2.000000e+00 : f32
    %8 = vector.broadcast %cst_2 : f32 to vector<8x256xf32>
    %9 = arith.addf %6, %8 : vector<8x256xf32>
    %10 = arith.divf %7, %9 : vector<8x256xf32>
    %c0_3 = arith.constant 0 : index
    %c0_4 = arith.constant 0 : index
    %11 = vector.load %arg2[%c0_3, %c0_4] : memref<8x256xf32, #tpu.memory_space<vmem>>, vector<8x256xf32>
    tpu.vector_store %arg2[%c0_3, %c0_4], %10 {strides = array<i32>} : memref<8x256xf32, #tpu.memory_space<vmem>>, vector<8x256xf32>,
    return
  }
  func.func @transform_0(%arg0: i32) -> (i32, i32) {
    %c0_i32 = arith.constant 0 : i32
    %c0_i32_0 = arith.constant 0 : i32
    return %arg0, %c0_i32 : i32, i32
  }
  func.func @transform_1(%arg0: i32) -> (i32, i32) {
    %c0_i32 = arith.constant 0 : i32
    %c0_i32_0 = arith.constant 0 : i32
    return %arg0, %c0_i32 : i32, i32
  }
}

</mosaic_0001>

<bundles_post_ra>
// kernel: tpu_custom_call.1
= control target key start
LH: loop header
LB: loop body
LE: loop exit
PB: predicated region body
PF: predicated region fallthrough
CT: control target
= control target key end

     0   :  { %6 = vsyncpa [#allocation3], 0  ;;  %s152_s0 = inlined_call_operand.hbm [shape: f32[8,256], index: 0, kind: input, shape index: {}]   ;;  %s153_s1 = inlined_call_operand.hbm [shape: f32[8,256], index: 1, kind: output, shape index: {}]  }
   0x1   :  { %7 = vsyncpa [#allocation4], 0  ;;  %s116_s6 = smov [#allocation2]   ;;  %s68_s10 = scalar_lea.hbm %s152_s0, 256 }
   0x2   :  { %s14_s7 = sshll.u32 %s116_s6, 4  ;;  %p69_p0 = scmp.ne.s32.totalorder %s152_s0, %s68_s10  ;;  %s15_s7 = int_to_ptr.vmem [resolvable:$true] %s14_s7 }
   0x3   :  { %p72_p1 = scmp.lt.u32.totalorder %s68_s10, %s152_s0 }
   0x5   :  { %p74_p2 = pnand %p72_p1, %p69_p0 }
   0x7   :  { %77 = shalt.err (!%p74_p2)
}
   0x8   :  { %s78_s15 = scalar_lea.vmem %s15_s7, 256  ;;  %p83_p4 = scmp.lt.s32.totalorder %s15_s7, %s15_s7 }
   0x9   :  { %p79_p3 = scmp.ne.s32.totalorder %s15_s7, %s78_s15  ;;  %p84_p5 = scmp.lt.s32.totalorder %s78_s15, %s78_s15 }
   0xb   :  { %p85_p6 = por %p84_p5, %p83_p4 }
   0xd   :  { %p86_p7 = pnand %p85_p6, %p79_p3 }
   0xf   :  { %89 = shalt.err (!%p86_p7)
}
  0x10   :  { %17 = dma.hbm_to_vmem [thread:$0]  %s152_s0, 256, %s15_s7, [#allocation3]  }
  0x11   :  { %112 = dma.done.wait [#allocation3], 256  }
  0x12   :  { %113 = vsyncadd [#allocation3], 4294967040  ;;  %v21_v0 = vld [vmem:[#allocation2] sm:$0xff]  ;;  %v22_v1 = vld [vmem:[#allocation2 + $0x8] sm:$0xff]  ;;  %s117_s0 = smov [#allocation5]  }
  0x13   :  { %v23_v2 = vmin.f32 %v21_v0, 20.0  ;;  %v24_v3 = vmin.f32 %v22_v1, 20.0  ;;  %s49_s18 = sshll.u32 %s117_s0, 4  ;;  %s50_s18 = int_to_ptr.vmem [resolvable:$true] %s49_s18 }
  0x14   :  { %s90_s19 = scalar_lea.vmem %s50_s18, 256  ;;  %p95_p9 = scmp.lt.s32.totalorder %s50_s18, %s50_s18 }
  0x15   :  { %v25_v4 = vmul.f32 1.442695, %v23_v2  ;;  %v27_v5 = vmul.f32 1.442695, %v24_v3  ;;  %p91_p8 = scmp.ne.s32.totalorder %s50_s18, %s90_s19  ;;  %p96_p10 = scmp.lt.s32.totalorder %s90_s19, %s90_s19 }
  0x17   :  { %60 = vpow2.f32 %v25_v4  ;;  %p97_p11 = por %p96_p10, %p95_p9 }
  0x18   :  { %62 = vpow2.f32 %v27_v5 }
  0x19   :  { %p98_p12 = pnand %p97_p11, %p91_p8 }
  0x21   :  { %v61_v6 = vpop.eup %60 }
  0x22   :  { %v63_v7 = vpop.eup %62  ;;  %v29_v8 = vadd.f32 2.0, %v61_v6 }
  0x23   :  { %v30_v9 = vadd.f32 2.0, %v63_v7 }
  0x24   :  { %v31_v10 = vmul.f32 %v61_v6, %v29_v8 }
  0x25   :  { %v32_v11 = vmul.f32 %v63_v7, %v30_v9 }
  0x26   :  { %v35_v12 = vadd.f32 2.0, %v31_v10  ;;  %v33_v14 = vmul.f32 %v31_v10, %v21_v0 }
  0x27   :  { %v36_v13 = vadd.f32 2.0, %v32_v11  ;;  %v34_v15 = vmul.f32 %v32_v11, %v22_v1 }
  0x28   :  { %64 = vrcp.f32 %v35_v12 }
  0x29   :  { %66 = vrcp.f32 %v36_v13 }
  0x32   :  { %v65_v16 = vpop.eup %64 }
  0x33   :  { %v67_v17 = vpop.eup %66  ;;  %v38_v18 = vmul.f32 %v65_v16, %v33_v14 }
  0x34   :  { %v40_v19 = vmul.f32 %v67_v17, %v34_v15 }
  0x35   :  { %41 = vst [vmem:[#allocation5] sm:$0xff] %v38_v18 }
  0x36   :  { %42 = vst [vmem:[#allocation5 + $0x8] sm:$0xff] %v40_v19 }
  0x37   :  { %101 = shalt.err (!%p98_p12)
}
  0x38   :  { %s102_s22 = scalar_lea.hbm %s153_s1, 256 }
  0x39   :  { %p103_p13 = scmp.ne.s32.totalorder %s153_s1, %s102_s22  ;;  %p106_p0 = scmp.lt.u32.totalorder %s102_s22, %s153_s1 }
  0x3b   :  { %p108_p1 = pnand %p106_p0, %p103_p13 }
  0x3d   :  { %111 = shalt.err (!%p108_p1)
}
  0x3e   :  { %52 = dma.vmem_to_hbm [thread:$0]  %s50_s18, 256, %s153_s1, [#allocation4]  }
  0x3f   :  { %114 = dma.done.wait [#allocation4], 256  }
  0x40   :  { %115 = vsyncadd [#allocation4], 4294967040 }
  0x41   :  { %56 = vsyncpa [#allocation3], 1 }
  0x42   :  { %57 = vsyncpa [#allocation4], 1 }

</bundles_post_ra>
